<compile_context>
chip_gen: v6e
topology: v6e:2x2x1
jax: 0.10.0
libtpu: 0.0.40
codegen_flags: <defaults>
</compile_context>

<pallas_src>
import jax
import jax.numpy as jnp
from jax.experimental import pallas as pl
from jax.experimental.pallas import tpu as pltpu

_VMEM_LIMIT = 32 * 1024 * 1024  # safe on v5e/v6e (128 MiB) and v7x (64 MiB)


def _round_up(x, m):
    return (x + m - 1) // m * m


# ---------------------------------------------------------------------------
# Pallas kernels
# ---------------------------------------------------------------------------
def _conv_pool_bn_act_kernel(a_ref, w_ref, s_ref, t_ref, o_ref):
    """One M-tile of: clip((A_pooled @ W) * scale + shift, 0, 1) -> bf16 store.

    A_pooled already holds the 2x2 AvgPool tap sums (pool folded into the
    patch matrix; 1/4 folded into `scale`), so conv -> pool -> BN -> Hardtanh
    collapses into a single GEMM + affine + clip epilogue.  Accumulation and
    epilogue math stay f32 (v5e VPU has no bf16 path); only the store is bf16.
    """
    acc = jnp.dot(a_ref[...], w_ref[...], preferred_element_type=jnp.float32)
    y = jnp.clip(acc * s_ref[...] + t_ref[...], 0.0, 1.0)
    o_ref[...] = y.astype(o_ref.dtype)


def _fc_chain_kernel(x_ref, w1_ref, w2_ref, w3_ref, s_ref, t_ref, o_ref):
    """fc1 -> Hardtanh(0,1) -> fc2 -> Hardtanh(0,1) -> fc3 -> BatchNorm1d(10),
    all operands VMEM-resident (zero intermediate HBM traffic)."""
    h = jnp.dot(x_ref[...], w1_ref[...], preferred_element_type=jnp.float32)
    h = jnp.clip(h, 0.0, 1.0)
    h = jnp.dot(h, w2_ref[...].astype(jnp.float32),
                preferred_element_type=jnp.float32)
    h = jnp.clip(h, 0.0, 1.0)
    h = jnp.dot(h, w3_ref[...].astype(jnp.float32),
                preferred_element_type=jnp.float32)
    o_ref[...] = h * s_ref[...] + t_ref[...]


# ---------------------------------------------------------------------------
# pallas_call wrappers
# ---------------------------------------------------------------------------
def _grid_and_tile(m, target_tm=512):
    """>=2 grid steps (v7x dual-TC), tile a multiple of 8, no near-empty tail."""
    grid = max(2, pl.cdiv(m, target_tm))
    tm = _round_up(pl.cdiv(m, grid), 8)
    return grid, tm, grid * tm


def conv_pool_bn_act(patches, w, scale, shift, *, target_tm=512):
    """patches: (M, K) bf16 pooled im2col; w: (K, Cout) bf16;
    scale/shift: (1, Cout) f32.  Returns (M, Cout) bf16."""
    m, k = patches.shape
    cout = w.shape[1]
    grid, tm, mp = _grid_and_tile(m, target_tm)
    if mp > m:
        patches = jnp.pad(patches, ((0, mp - m), (0, 0)))
    out = pl.pallas_call(
        _conv_pool_bn_act_kernel,
        grid=(grid,),
        in_specs=[
            pl.BlockSpec((tm, k), lambda i: (i, 0)),      # K unpadded (full dim)
            pl.BlockSpec((k, cout), lambda i: (0, 0)),
            pl.BlockSpec((1, cout), lambda i: (0, 0)),
            pl.BlockSpec((1, cout), lambda i: (0, 0)),
        ],
        out_specs=pl.BlockSpec((tm, cout), lambda i: (i, 0)),
        out_shape=jax.ShapeDtypeStruct((mp, cout), jnp.bfloat16),
        compiler_params=pltpu.CompilerParams(
            dimension_semantics=("parallel",),
            vmem_limit_bytes=_VMEM_LIMIT),
    )(patches, w, scale, shift)
    return out[:m] if mp > m else out


def fc_chain(x, w1, w2, w3, scale, shift):
    """x: (N, 400) bf16; w1/w2/w3 bf16 (in, out); scale/shift (1, 10) f32."""
    n, k = x.shape
    f1, f2, f3 = w1.shape[1], w2.shape[1], w3.shape[1]
    return pl.pallas_call(
        _fc_chain_kernel,
        grid=(1,),
        in_specs=[
            pl.BlockSpec((n, k), lambda i: (0, 0)),
            pl.BlockSpec((k, f1), lambda i: (0, 0)),
            pl.BlockSpec((f1, f2), lambda i: (0, 0)),
            pl.BlockSpec((f2, f3), lambda i: (0, 0)),
            pl.BlockSpec((1, f3), lambda i: (0, 0)),
            pl.BlockSpec((1, f3), lambda i: (0, 0)),
        ],
        out_specs=pl.BlockSpec((n, f3), lambda i: (0, 0)),
        out_shape=jax.ShapeDtypeStruct((n, f3), jnp.float32),
        compiler_params=pltpu.CompilerParams(
            dimension_semantics=("arbitrary",),
            vmem_limit_bytes=_VMEM_LIMIT),
    )(x, w1, w2, w3, scale, shift)


# ---------------------------------------------------------------------------
# Plain-JAX glue: pooled im2col + parameter preparation
# ---------------------------------------------------------------------------
def pooled_patches(x_nhwc, kh, kw, pad):
    """im2col with the 2x2 AvgPool folded in (tap SUMS; the 1/4 is folded into
    the BN scale).  Returns (N * Ho/2 * Wo/2, kh*kw*C), feature order (i,j,c)."""
    if pad > 0:
        x_nhwc = jnp.pad(x_nhwc, ((0, 0), (pad, pad), (pad, pad), (0, 0)))
    N, Hp, Wp, C = x_nhwc.shape
    Ho, Wo = Hp - kh + 1, Wp - kw + 1
    cols = [x_nhwc[:, i:i + Ho, j:j + Wo, :] for i in range(kh) for j in range(kw)]
    p = jnp.concatenate(cols, axis=-1)                        # (N, Ho, Wo, K)
    K = kh * kw * C
    p = p.reshape(N, Ho // 2, 2, Wo // 2, 2, K).sum(axis=(2, 4))
    return p.reshape(N * (Ho // 2) * (Wo // 2), K)


def _bn_affine(gamma, beta, mean, var, eps=1e-5, pre_scale=1.0):
    s = gamma * jax.lax.rsqrt(var + eps)
    scale = (pre_scale * s).reshape(1, -1).astype(jnp.float32)
    shift = (beta - mean * s).reshape(1, -1).astype(jnp.float32)
    return scale, shift


def init_params(key):
    k = jax.random.split(key, 5)
    p = {}
    # Conv2d_Add_Partial weights: (Cout, Cin, KH, KW), no bias.
    p["conv1_w"] = 0.1 * jax.random.normal(k[0], (6, 1, 5, 5), jnp.float32)
    p["conv2_w"] = 0.1 * jax.random.normal(k[1], (16, 6, 5, 5), jnp.float32)
    # Linear_Or weights: (out, in), no bias.
    p["fc1_w"] = 0.05 * jax.random.normal(k[2], (120, 400), jnp.float32)
    p["fc2_w"] = 0.05 * jax.random.normal(k[3], (84, 120), jnp.float32)
    p["fc3_w"] = 0.05 * jax.random.normal(k[4], (10, 84), jnp.float32)
    # BatchNorm*_fixed (eval mode), PyTorch default init.
    for name, c in (("bn1", 6), ("bn2", 16)):
        p[f"{name}_gamma"] = jnp.ones((c,), jnp.float32)
        p[f"{name}_beta"] = jnp.zeros((c,), jnp.float32)
        p[f"{name}_mean"] = jnp.zeros((c,), jnp.float32)
        p[f"{name}_var"] = jnp.ones((c,), jnp.float32)
    # BatchNorm1d_fixed(10, affine=False).
    p["bn_mean"] = jnp.zeros((10,), jnp.float32)
    p["bn_var"] = jnp.ones((10,), jnp.float32)
    return p


def prepare_params(p):
    """One-time prep: weights -> GEMM layout bf16, eval-mode BN folded to
    scale/shift (with the 1/4 AvgPool factor), fc1 columns permuted to the
    NHWC flatten order.  Returns an arrays-only pytree (jit-safe)."""
    q = {}
    # Conv weights (Cout,Cin,KH,KW) -> (KH*KW*Cin, Cout), matching patch order.
    q["conv1_w"] = jnp.transpose(p["conv1_w"], (2, 3, 1, 0)).reshape(25, 6).astype(jnp.bfloat16)
    q["conv2_w"] = jnp.transpose(p["conv2_w"], (2, 3, 1, 0)).reshape(150, 16).astype(jnp.bfloat16)
    # BN folded (pool's 1/4 goes into scale; pool/BN commute with each other).
    q["conv1_s"], q["conv1_t"] = _bn_affine(p["bn1_gamma"], p["bn1_beta"],
                                            p["bn1_mean"], p["bn1_var"], pre_scale=0.25)
    q["conv2_s"], q["conv2_t"] = _bn_affine(p["bn2_gamma"], p["bn2_beta"],
                                            p["bn2_mean"], p["bn2_var"], pre_scale=0.25)
    # fc1: PyTorch flattens NCHW as (c,h,w); our activations are NHWC (h,w,c).
    w1 = p["fc1_w"].reshape(120, 16, 5, 5)                 # (o, c, h, w)
    w1 = jnp.transpose(w1, (2, 3, 1, 0)).reshape(400, 120)  # rows ordered (h,w,c)
    q["fc1_w"] = w1.astype(jnp.bfloat16)
    q["fc2_w"] = p["fc2_w"].T.astype(jnp.bfloat16)          # (120, 84)
    q["fc3_w"] = p["fc3_w"].T.astype(jnp.bfloat16)          # (84, 10)
    # Final BatchNorm1d(10, affine=False).
    q["bn_s"], q["bn_t"] = _bn_affine(jnp.ones((10,), jnp.float32),
                                      jnp.zeros((10,), jnp.float32),
                                      p["bn_mean"], p["bn_var"])
    return q


# ---------------------------------------------------------------------------
# Forward pass (mirrors CONV_minimal_add_partial.forward, eval-mode BN)
# ---------------------------------------------------------------------------
def forward(prep, x_nchw):
    n = x_nchw.shape[0]
    x = jnp.transpose(x_nchw, (0, 2, 3, 1)).astype(jnp.bfloat16)   # NCHW -> NHWC

    # conv1 -> pool -> bn1 -> hardtanh(0,1): one fused GEMM kernel.
    p1 = pooled_patches(x, kh=5, kw=5, pad=2)                       # (n*196, 25)
    a1 = conv_pool_bn_act(p1, prep["conv1_w"], prep["conv1_s"], prep["conv1_t"])
    a1 = a1.reshape(n, 14, 14, 6)                                   # bf16, in [0,1]

    # conv2 -> pool -> bn2 -> hardtanh(0,1): one fused GEMM kernel.
    p2 = pooled_patches(a1, kh=5, kw=5, pad=0)                      # (n*25, 150)
    a2 = conv_pool_bn_act(p2, prep["conv2_w"], prep["conv2_s"], prep["conv2_t"])

    # Flatten (NHWC order; fc1 weight was permuted to match -> no transpose/pad).
    xf = a2.reshape(n, 400)

    # fc1 -> tanh -> fc2 -> tanh -> fc3 -> BatchNorm1d(10), single kernel.
    return fc_chain(xf, prep["fc1_w"], prep["fc2_w"], prep["fc3_w"],
                    prep["bn_s"], prep["bn_t"])                     # (n, 10) f32


if __name__ == "__main__":
    key = jax.random.PRNGKey(0)
    pkey, xkey = jax.random.split(key)
    params = init_params(pkey)
    prep = prepare_params(params)
    # Input spatial size is fixed by the architecture's view(-1, 16*5*5): 1x28x28.
    x = jax.random.normal(xkey, (2, 1, 28, 28), jnp.float32)

    out = jax.jit(forward)(prep, x)
    out = jax.block_until_ready(out)
    assert out.shape == (2, 10) and out.dtype == jnp.float32
    print("KERNEL_OK")
</pallas_src>

<mosaic_0001>
module attributes {stable_mosaic.version = 11 : i64} {
  func.func @_conv_pool_bn_act_kernel(%arg0: i32, %arg1: memref<200x25xbf16, #tpu.memory_space<vmem>>, %arg2: memref<25x6xbf16, #tpu.memory_space<vmem>>, %arg3: memref<1x6xf32, #tpu.memory_space<vmem>>, %arg4: memref<1x6xf32, #tpu.memory_space<vmem>>, %arg5: memref<200x6xbf16, #tpu.memory_space<vmem>>) attributes {dimension_semantics = [#tpu.dimension_semantics<parallel>], iteration_bounds = array<i64: 2>, scalar_prefetch = 0 : i64, scratch_operands = 0 : i64, tpu.core_type = #tpu.core_type<tc>, window_params = [{transform_indices = @transform_0, window_bounds = array<i64: 200, 25>}, {pipeline_mode = #tpu.pipeline_mode<synchronous>, transform_indices = @transform_1, window_bounds = array<i64: 25, 6>}, {pipeline_mode = #tpu.pipeline_mode<synchronous>, transform_indices = @transform_2, window_bounds = array<i64: 1, 6>}, {pipeline_mode = #tpu.pipeline_mode<synchronous>, transform_indices = @transform_3, window_bounds = array<i64: 1, 6>}, {transform_indices = @transform_4, window_bounds = array<i64: 200, 6>}]} {
    %c0 = arith.constant 0 : index
    %c0_0 = arith.constant 0 : index
    %0 = vector.load %arg1[%c0, %c0_0] : memref<200x25xbf16, #tpu.memory_space<vmem>>, vector<200x25xbf16>
    %c0_1 = arith.constant 0 : index
    %c0_2 = arith.constant 0 : index
    %1 = vector.load %arg2[%c0_1, %c0_2] : memref<25x6xbf16, #tpu.memory_space<vmem>>, vector<25x6xbf16>
    %cst = arith.constant dense<0.000000e+00> : vector<200x6xf32>
    %2 = tpu.matmul %0, %1, %cst {dimension_numbers = #tpu.dot_dimension_numbers<[1], [0], [0], [1], [0, 0, 1, 1], [], []>} : vector<200x25xbf16>, vector<25x6xbf16>, vector<200x6xf32> -> vector<200x6xf32>
    %c0_3 = arith.constant 0 : index
    %c0_4 = arith.constant 0 : index
    %3 = vector.load %arg3[%c0_3, %c0_4] : memref<1x6xf32, #tpu.memory_space<vmem>>, vector<1x6xf32>
    %4 = vector.broadcast %3 : vector<1x6xf32> to vector<200x6xf32>
    %5 = arith.mulf %2, %4 : vector<200x6xf32>
    %c0_5 = arith.constant 0 : index
    %c0_6 = arith.constant 0 : index
    %6 = vector.load %arg4[%c0_5, %c0_6] : memref<1x6xf32, #tpu.memory_space<vmem>>, vector<1x6xf32>
    %7 = vector.broadcast %6 : vector<1x6xf32> to vector<200x6xf32>
    %8 = arith.addf %5, %7 : vector<200x6xf32>
    %cst_7 = arith.constant 0.000000e+00 : f32
    %cst_8 = arith.constant 1.000000e+00 : f32
    %9 = vector.broadcast %cst_7 : f32 to vector<200x6xf32>
    %10 = arith.maximumf %9, %8 : vector<200x6xf32>
    %11 = vector.broadcast %cst_8 : f32 to vector<200x6xf32>
    %12 = arith.minimumf %11, %10 : vector<200x6xf32>
    %13 = arith.truncf %12 : vector<200x6xf32> to vector<200x6xbf16>
    %c0_9 = arith.constant 0 : index
    %c0_10 = arith.constant 0 : index
    %14 = vector.load %arg5[%c0_9, %c0_10] : memref<200x6xbf16, #tpu.memory_space<vmem>>, vector<200x6xbf16>
    tpu.vector_store %arg5[%c0_9, %c0_10], %13 {strides = array<i32>} : memref<200x6xbf16, #tpu.memory_space<vmem>>, vector<200x6xbf16>,
    return
  }
  func.func @transform_0(%arg0: i32) -> (i32, i32) {
    %c0_i32 = arith.constant 0 : i32
    %c0_i32_0 = arith.constant 0 : i32
    return %arg0, %c0_i32 : i32, i32
  }
  func.func @transform_1(%arg0: i32) -> (i32, i32) {
    %c0_i32 = arith.constant 0 : i32
    %c0_i32_0 = arith.constant 0 : i32
    %c0_i32_1 = arith.constant 0 : i32
    return %c0_i32, %c0_i32_0 : i32, i32
  }
  func.func @transform_2(%arg0: i32) -> (i32, i32) {
    %c0_i32 = arith.constant 0 : i32
    %c0_i32_0 = arith.constant 0 : i32
    %c0_i32_1 = arith.constant 0 : i32
    return %c0_i32, %c0_i32_0 : i32, i32
  }
  func.func @transform_3(%arg0: i32) -> (i32, i32) {
    %c0_i32 = arith.constant 0 : i32
    %c0_i32_0 = arith.constant 0 : i32
    %c0_i32_1 = arith.constant 0 : i32
    return %c0_i32, %c0_i32_0 : i32, i32
  }
  func.func @transform_4(%arg0: i32) -> (i32, i32) {
    %c0_i32 = arith.constant 0 : i32
    %c0_i32_0 = arith.constant 0 : i32
    return %arg0, %c0_i32 : i32, i32
  }
}

module attributes {stable_mosaic.version = 11 : i64} {
  func.func @_conv_pool_bn_act_kernel(%arg0: i32, %arg1: memref<32x150xbf16, #tpu.memory_space<vmem>>, %arg2: memref<150x16xbf16, #tpu.memory_space<vmem>>, %arg3: memref<1x16xf32, #tpu.memory_space<vmem>>, %arg4: memref<1x16xf32, #tpu.memory_space<vmem>>, %arg5: memref<32x16xbf16, #tpu.memory_space<vmem>>) attributes {dimension_semantics = [#tpu.dimension_semantics<parallel>], iteration_bounds = array<i64: 2>, scalar_prefetch = 0 : i64, scratch_operands = 0 : i64, tpu.core_type = #tpu.core_type<tc>, window_params = [{transform_indices = @transform_0, window_bounds = array<i64: 32, 150>}, {pipeline_mode = #tpu.pipeline_mode<synchronous>, transform_indices = @transform_1, window_bounds = array<i64: 150, 16>}, {pipeline_mode = #tpu.pipeline_mode<synchronous>, transform_indices = @transform_2, window_bounds = array<i64: 1, 16>}, {pipeline_mode = #tpu.pipeline_mode<synchronous>, transform_indices = @transform_3, window_bounds = array<i64: 1, 16>}, {transform_indices = @transform_4, window_bounds = array<i64: 32, 16>}]} {
    %c0 = arith.constant 0 : index
    %c0_0 = arith.constant 0 : index
    %0 = vector.load %arg1[%c0, %c0_0] : memref<32x150xbf16, #tpu.memory_space<vmem>>, vector<32x150xbf16>
    %c0_1 = arith.constant 0 : index
    %c0_2 = arith.constant 0 : index
    %1 = vector.load %arg2[%c0_1, %c0_2] : memref<150x16xbf16, #tpu.memory_space<vmem>>, vector<150x16xbf16>
    %cst = arith.constant dense<0.000000e+00> : vector<32x16xf32>
    %2 = tpu.matmul %0, %1, %cst {dimension_numbers = #tpu.dot_dimension_numbers<[1], [0], [0], [1], [0, 0, 1, 1], [], []>} : vector<32x150xbf16>, vector<150x16xbf16>, vector<32x16xf32> -> vector<32x16xf32>
    %c0_3 = arith.constant 0 : index
    %c0_4 = arith.constant 0 : index
    %3 = vector.load %arg3[%c0_3, %c0_4] : memref<1x16xf32, #tpu.memory_space<vmem>>, vector<1x16xf32>
    %4 = vector.broadcast %3 : vector<1x16xf32> to vector<32x16xf32>
    %5 = arith.mulf %2, %4 : vector<32x16xf32>
    %c0_5 = arith.constant 0 : index
    %c0_6 = arith.constant 0 : index
    %6 = vector.load %arg4[%c0_5, %c0_6] : memref<1x16xf32, #tpu.memory_space<vmem>>, vector<1x16xf32>
    %7 = vector.broadcast %6 : vector<1x16xf32> to vector<32x16xf32>
    %8 = arith.addf %5, %7 : vector<32x16xf32>
    %cst_7 = arith.constant 0.000000e+00 : f32
    %cst_8 = arith.constant 1.000000e+00 : f32
    %9 = vector.broadcast %cst_7 : f32 to vector<32x16xf32>
    %10 = arith.maximumf %9, %8 : vector<32x16xf32>
    %11 = vector.broadcast %cst_8 : f32 to vector<32x16xf32>
    %12 = arith.minimumf %11, %10 : vector<32x16xf32>
    %13 = arith.truncf %12 : vector<32x16xf32> to vector<32x16xbf16>
    %c0_9 = arith.constant 0 : index
    %c0_10 = arith.constant 0 : index
    %14 = vector.load %arg5[%c0_9, %c0_10] : memref<32x16xbf16, #tpu.memory_space<vmem>>, vector<32x16xbf16>
    tpu.vector_store %arg5[%c0_9, %c0_10], %13 {strides = array<i32>} : memref<32x16xbf16, #tpu.memory_space<vmem>>, vector<32x16xbf16>,
    return
  }
  func.func @transform_0(%arg0: i32) -> (i32, i32) {
    %c0_i32 = arith.constant 0 : i32
    %c0_i32_0 = arith.constant 0 : i32
    return %arg0, %c0_i32 : i32, i32
  }
  func.func @transform_1(%arg0: i32) -> (i32, i32) {
    %c0_i32 = arith.constant 0 : i32
    %c0_i32_0 = arith.constant 0 : i32
    %c0_i32_1 = arith.constant 0 : i32
    return %c0_i32, %c0_i32_0 : i32, i32
  }
  func.func @transform_2(%arg0: i32) -> (i32, i32) {
    %c0_i32 = arith.constant 0 : i32
    %c0_i32_0 = arith.constant 0 : i32
    %c0_i32_1 = arith.constant 0 : i32
    return %c0_i32, %c0_i32_0 : i32, i32
  }
  func.func @transform_3(%arg0: i32) -> (i32, i32) {
    %c0_i32 = arith.constant 0 : i32
    %c0_i32_0 = arith.constant 0 : i32
    %c0_i32_1 = arith.constant 0 : i32
    return %c0_i32, %c0_i32_0 : i32, i32
  }
  func.func @transform_4(%arg0: i32) -> (i32, i32) {
    %c0_i32 = arith.constant 0 : i32
    %c0_i32_0 = arith.constant 0 : i32
    return %arg0, %c0_i32 : i32, i32
  }
}

module attributes {stable_mosaic.version = 11 : i64} {
  func.func @_fc_chain_kernel(%arg0: i32, %arg1: memref<2x400xbf16, #tpu.memory_space<vmem>>, %arg2: memref<400x120xbf16, #tpu.memory_space<vmem>>, %arg3: memref<120x84xbf16, #tpu.memory_space<vmem>>, %arg4: memref<84x10xbf16, #tpu.memory_space<vmem>>, %arg5: memref<1x10xf32, #tpu.memory_space<vmem>>, %arg6: memref<1x10xf32, #tpu.memory_space<vmem>>, %arg7: memref<2x10xf32, #tpu.memory_space<vmem>>) attributes {dimension_semantics = [#tpu.dimension_semantics<arbitrary>], iteration_bounds = array<i64: 1>, scalar_prefetch = 0 : i64, scratch_operands = 0 : i64, tpu.core_type = #tpu.core_type<tc>, window_params = [{pipeline_mode = #tpu.pipeline_mode<synchronous>, transform_indices = @transform_0, window_bounds = array<i64: 2, 400>}, {pipeline_mode = #tpu.pipeline_mode<synchronous>, transform_indices = @transform_1, window_bounds = array<i64: 400, 120>}, {pipeline_mode = #tpu.pipeline_mode<synchronous>, transform_indices = @transform_2, window_bounds = array<i64: 120, 84>}, {pipeline_mode = #tpu.pipeline_mode<synchronous>, transform_indices = @transform_3, window_bounds = array<i64: 84, 10>}, {pipeline_mode = #tpu.pipeline_mode<synchronous>, transform_indices = @transform_4, window_bounds = array<i64: 1, 10>}, {pipeline_mode = #tpu.pipeline_mode<synchronous>, transform_indices = @transform_5, window_bounds = array<i64: 1, 10>}, {pipeline_mode = #tpu.pipeline_mode<synchronous>, transform_indices = @transform_6, window_bounds = array<i64: 2, 10>}]} {
    %c0 = arith.constant 0 : index
    %c0_0 = arith.constant 0 : index
    %0 = vector.load %arg1[%c0, %c0_0] : memref<2x400xbf16, #tpu.memory_space<vmem>>, vector<2x400xbf16>
    %c0_1 = arith.constant 0 : index
    %c0_2 = arith.constant 0 : index
    %1 = vector.load %arg2[%c0_1, %c0_2] : memref<400x120xbf16, #tpu.memory_space<vmem>>, vector<400x120xbf16>
    %cst = arith.constant dense<0.000000e+00> : vector<2x120xf32>
    %2 = tpu.matmul %0, %1, %cst {dimension_numbers = #tpu.dot_dimension_numbers<[1], [0], [0], [1], [0, 0, 1, 1], [], []>} : vector<2x400xbf16>, vector<400x120xbf16>, vector<2x120xf32> -> vector<2x120xf32>
    %cst_3 = arith.constant 0.000000e+00 : f32
    %cst_4 = arith.constant 1.000000e+00 : f32
    %3 = vector.broadcast %cst_3 : f32 to vector<2x120xf32>
    %4 = arith.maximumf %3, %2 : vector<2x120xf32>
    %5 = vector.broadcast %cst_4 : f32 to vector<2x120xf32>
    %6 = arith.minimumf %5, %4 : vector<2x120xf32>
    %c0_5 = arith.constant 0 : index
    %c0_6 = arith.constant 0 : index
    %7 = vector.load %arg3[%c0_5, %c0_6] : memref<120x84xbf16, #tpu.memory_space<vmem>>, vector<120x84xbf16>
    %8 = arith.extf %7 : vector<120x84xbf16> to vector<120x84xf32>
    %cst_7 = arith.constant dense<0.000000e+00> : vector<2x84xf32>
    %9 = tpu.matmul %6, %8, %cst_7 {dimension_numbers = #tpu.dot_dimension_numbers<[1], [0], [0], [1], [0, 0, 1, 1], [], []>} : vector<2x120xf32>, vector<120x84xf32>, vector<2x84xf32> -> vector<2x84xf32>
    %cst_8 = arith.constant 0.000000e+00 : f32
    %cst_9 = arith.constant 1.000000e+00 : f32
    %10 = vector.broadcast %cst_8 : f32 to vector<2x84xf32>
    %11 = arith.maximumf %10, %9 : vector<2x84xf32>
    %12 = vector.broadcast %cst_9 : f32 to vector<2x84xf32>
    %13 = arith.minimumf %12, %11 : vector<2x84xf32>
    %c0_10 = arith.constant 0 : index
    %c0_11 = arith.constant 0 : index
    %14 = vector.load %arg4[%c0_10, %c0_11] : memref<84x10xbf16, #tpu.memory_space<vmem>>, vector<84x10xbf16>
    %15 = arith.extf %14 : vector<84x10xbf16> to vector<84x10xf32>
    %cst_12 = arith.constant dense<0.000000e+00> : vector<2x10xf32>
    %16 = tpu.matmul %13, %15, %cst_12 {dimension_numbers = #tpu.dot_dimension_numbers<[1], [0], [0], [1], [0, 0, 1, 1], [], []>} : vector<2x84xf32>, vector<84x10xf32>, vector<2x10xf32> -> vector<2x10xf32>
    %c0_13 = arith.constant 0 : index
    %c0_14 = arith.constant 0 : index
    %17 = vector.load %arg5[%c0_13, %c0_14] : memref<1x10xf32, #tpu.memory_space<vmem>>, vector<1x10xf32>
    %18 = vector.broadcast %17 : vector<1x10xf32> to vector<2x10xf32>
    %19 = arith.mulf %16, %18 : vector<2x10xf32>
    %c0_15 = arith.constant 0 : index
    %c0_16 = arith.constant 0 : index
    %20 = vector.load %arg6[%c0_15, %c0_16] : memref<1x10xf32, #tpu.memory_space<vmem>>, vector<1x10xf32>
    %21 = vector.broadcast %20 : vector<1x10xf32> to vector<2x10xf32>
    %22 = arith.addf %19, %21 : vector<2x10xf32>
    %c0_17 = arith.constant 0 : index
    %c0_18 = arith.constant 0 : index
    %23 = vector.load %arg7[%c0_17, %c0_18] : memref<2x10xf32, #tpu.memory_space<vmem>>, vector<2x10xf32>
    tpu.vector_store %arg7[%c0_17, %c0_18], %22 {strides = array<i32>} : memref<2x10xf32, #tpu.memory_space<vmem>>, vector<2x10xf32>,
    return
  }
  func.func @transform_0(%arg0: i32) -> (i32, i32) {
    %c0_i32 = arith.constant 0 : i32
    %c0_i32_0 = arith.constant 0 : i32
    %c0_i32_1 = arith.constant 0 : i32
    return %c0_i32, %c0_i32_0 : i32, i32
  }
  func.func @transform_1(%arg0: i32) -> (i32, i32) {
    %c0_i32 = arith.constant 0 : i32
    %c0_i32_0 = arith.constant 0 : i32
    %c0_i32_1 = arith.constant 0 : i32
    return %c0_i32, %c0_i32_0 : i32, i32
  }
  func.func @transform_2(%arg0: i32) -> (i32, i32) {
    %c0_i32 = arith.constant 0 : i32
    %c0_i32_0 = arith.constant 0 : i32
    %c0_i32_1 = arith.constant 0 : i32
    return %c0_i32, %c0_i32_0 : i32, i32
  }
  func.func @transform_3(%arg0: i32) -> (i32, i32) {
    %c0_i32 = arith.constant 0 : i32
    %c0_i32_0 = arith.constant 0 : i32
    %c0_i32_1 = arith.constant 0 : i32
    return %c0_i32, %c0_i32_0 : i32, i32
  }
  func.func @transform_4(%arg0: i32) -> (i32, i32) {
    %c0_i32 = arith.constant 0 : i32
    %c0_i32_0 = arith.constant 0 : i32
    %c0_i32_1 = arith.constant 0 : i32
    return %c0_i32, %c0_i32_0 : i32, i32
  }
  func.func @transform_5(%arg0: i32) -> (i32, i32) {
    %c0_i32 = arith.constant 0 : i32
    %c0_i32_0 = arith.constant 0 : i32
    %c0_i32_1 = arith.constant 0 : i32
    return %c0_i32, %c0_i32_0 : i32, i32
  }
  func.func @transform_6(%arg0: i32) -> (i32, i32) {
    %c0_i32 = arith.constant 0 : i32
    %c0_i32_0 = arith.constant 0 : i32
    %c0_i32_1 = arith.constant 0 : i32
    return %c0_i32, %c0_i32_0 : i32, i32
  }
}

</mosaic_0001>

<bundles_post_ra>
// kernel: forward.3
= control target key start
LH: loop header
LB: loop body
LE: loop exit
PB: predicated region body
PF: predicated region fallthrough
CT: control target
= control target key end

     0   :  { %s1011_s15 = smov 0   ;;  %s1194_s0 = inlined_call_operand.vmem [shape: bf16[400,25], index: 0, kind: input, shape index: {}]   ;;  %s1195_s1 = inlined_call_operand.vmem [shape: bf16[25,6], index: 1, kind: input, shape index: {}]   ;;  %s1196_s2 = inlined_call_operand.vmem [shape: f32[1,6], index: 2, kind: input, shape index: {}]   ;;  %s1197_s3 = inlined_call_operand.vmem [shape: f32[1,6], index: 3, kind: input, shape index: {}]   ;;  %s1198_s4 = inlined_call_operand.vmem [shape: bf16[400,6], index: 4, kind: output, shape index: {}]  }
   0x1 LB: > { %s785_s16 = sadd.s32 4294967295, %s981_s15   ;;  %p789_p0 = scmp.ge.s32.totalorder %s981_s15, 1  ;;  %s981_s15 = sphi %s1011_s15, %s14_s15  }
   0x2   : > { %p163_p1 = scmp.lt.s32.totalorder %s981_s15, 3 }
   0x4   : > { %p164_p2 = pnand %p789_p0, %p163_p1 }
   0x5   : > { %s189_s19 = smul.u32 (!%p164_p2), 25, %s785_s16 }
   0x6   : > { %167 = sbr.rel (%p164_p2) target bundleno = 279 (0x117), region = 36 }
   0x7   : > { %p190_p3 = scmp.lt.s32.totalorder (!%p164_p2), %s189_s19, 49 }
   0xb   : > { %vm345_vm0 = vcmask 1043456   ;;  %v983_v0 = vmov 0.0   ;;  %v960_v1 = vld [vmem:[%s1195_s1 + $0x8] sm:$0x1f]   ;;  %vm346_vm1 = vcmask 1044480   ;;  %v984_v2 = vmov 65535  }
   0xc   : > { %889 = vmatprep.subr.bf16.mxu0 %v983_v0  ;;  %945 = vmatprep.subr.bf16.mxu1 %v983_v0  ;;  %v347_v3 = vsel %vm345_vm0, 4294967295, %v984_v2  ;;  %vm985_vm2 = vmmov 0   ;;  %v961_v6 = vld [vmem:[%s1195_s1] sm:$0xff]   ;;  %s1200_s19 = smov (!%p190_p3, %s189_s19), 49  ;;  %vm305_vm3 = vcmask 203776   ;;  %vm703_vm4 = vcmask 44032  }
   0xd   : > { %v348_v4 = vsel %vm346_vm1, %v347_v3, 0  ;;  %893 = vmatprep.mubr.msk.bf16.mxu0 %vm985_vm2, %v983_v0  ;;  %921 = vmatprep.mubr.msk.bf16.mxu1 %vm985_vm2, %v983_v0  ;;  %s790_s22 = sshll.u32 %s1200_s19, 2  ;;  %v1077_v20 = vld [vmem:[%s1196_s2] ss:$0 sm:$0xff] }
   0xe   : > { %v350_v5 = vand.u32 %v960_v1, %v348_v4  ;;  %s1035_s25 = scalar_lea.vmem %s1194_s0, %s790_s22  ;;  %v1082_v22 = vld [vmem:[%s1197_s3] ss:$0 sm:$0xff]  ;;  %s1097_s6 = scalar_lea.vmem %s1198_s4, %s790_s22 }
   0xf   : > { %v962_v7 = vld [vmem:[%s1035_s25] sm:$0xff]   ;;  %v963_v8 = vld [vmem:[%s1035_s25 + $0x38] sm:$0xff]   ;;  %v964_v9 = vld [vmem:[%s1035_s25 + $0x8] sm:$0xff]  }
  0x10   : > { %890 = vmatpush3.bf16.msra.mxu0 %v350_v5  ;;  %947 = vmatpush3.bf16.msra.mxu1 %v350_v5  ;;  %v965_v10 = vld [vmem:[%s1035_s25 + $0x40] sm:$0xff]   ;;  %v966_v11 = vld [vmem:[%s1035_s25 + $0x10] sm:$0xff]   ;;  %v967_v12 = vld [vmem:[%s1035_s25 + $0x48] sm:$0xff]  }
  0x11   : > { %891 = vmatprep.subr.bf16.mxu0 %v983_v0  ;;  %946 = vmatprep.subr.bf16.mxu1 %v983_v0  ;;  %v968_v13 = vld [vmem:[%s1035_s25 + $0x18] sm:$0xff]   ;;  %v969_v14 = vld [vmem:[%s1035_s25 + $0x50] sm:$0xff]   ;;  %v970_v15 = vld [vmem:[%s1035_s25 + $0x20] sm:$0xff]  }
  0x12   : > { %v971_v16 = vld [vmem:[%s1035_s25 + $0x58] sm:$0xff]   ;;  %v972_v17 = vld [vmem:[%s1035_s25 + $0x28] sm:$0xff]   ;;  %v973_v18 = vld [vmem:[%s1035_s25 + $0x60] ss:$0 sps:$4 sm:$0xff]  }
  0x13   : > { %v974_v19 = vld [vmem:[%s1035_s25 + $0x30] sm:$0xff]  }
  0x14   : > { %892 = vmatpush3.bf16.msra.mxu0 %v961_v6  ;;  %948 = vmatpush3.bf16.msra.mxu1 %v961_v6 }
  0x17   : > { %894 = vmatmul.mubr.msk.bf16.vlgmr.msra.gmra.mxu0 %vm305_vm3, %v962_v7  ;;  %922 = vmatmul.mubr.msk.bf16.vlgmr.msra.gmra.mxu1 %vm305_vm3, %v963_v8 }
  0x18   : > { %897 = vmatprep.mubr.msk.bf16.mxu0 %vm985_vm2, %v983_v0  ;;  %925 = vmatprep.mubr.msk.bf16.mxu1 %vm985_vm2, %v983_v0 }
  0x1f   : > { %898 = vmatmul.mubr.msk.bf16.gmra.mxu0 %vm305_vm3, %v964_v9  ;;  %926 = vmatmul.mubr.msk.bf16.gmra.mxu1 %vm305_vm3, %v965_v10 }
  0x20   : > { %901 = vmatprep.mubr.msk.bf16.mxu0 %vm985_vm2, %v983_v0  ;;  %929 = vmatprep.mubr.msk.bf16.mxu1 %vm985_vm2, %v983_v0 }
  0x27   : > { %902 = vmatmul.mubr.msk.bf16.gmra.mxu0 %vm305_vm3, %v966_v11  ;;  %930 = vmatmul.mubr.msk.bf16.gmra.mxu1 %vm305_vm3, %v967_v12 }
  0x28   : > { %905 = vmatprep.mubr.msk.bf16.mxu0 %vm985_vm2, %v983_v0  ;;  %933 = vmatprep.mubr.msk.bf16.mxu1 %vm985_vm2, %v983_v0 }
  0x2f   : > { %906 = vmatmul.mubr.msk.bf16.gmra.mxu0 %vm305_vm3, %v968_v13  ;;  %934 = vmatmul.mubr.msk.bf16.gmra.mxu1 %vm305_vm3, %v969_v14 }
  0x30   : > { %909 = vmatprep.mubr.msk.bf16.mxu0 %vm985_vm2, %v983_v0  ;;  %937 = vmatprep.mubr.msk.bf16.mxu1 %vm985_vm2, %v983_v0 }
  0x37   : > { %910 = vmatmul.mubr.msk.bf16.gmra.mxu0 %vm305_vm3, %v970_v15  ;;  %938 = vmatmul.mubr.msk.bf16.gmra.mxu1 %vm305_vm3, %v971_v16 }
  0x38   : > { %913 = vmatprep.mubr.msk.bf16.mxu0 %vm985_vm2, %v983_v0  ;;  %941 = vmatprep.mubr.msk.bf16.mxu1 %vm985_vm2, %v983_v0 }
  0x3f   : > { %914 = vmatmul.mubr.msk.bf16.gmra.mxu0 %vm305_vm3, %v972_v17  ;;  %942 = vmatmul.mubr.msk.bf16.gmra.mxu1 %vm305_vm3, %v973_v18 }
  0x40   : > { %917 = vmatprep.mubr.msk.bf16.mxu0 %vm985_vm2, %v983_v0 }
  0x47   : > { %918 = vmatmul.mubr.msk.bf16.gmra.mxu0 %vm305_vm3, %v974_v19 }
  0xd7   : > { %v386_v21 = vpop.f32.mrf.mxu0  ;;  %v442_v23 = vpop.f32.mrf.mxu1 }
  0xd8   : > { %v495_v24 = vmul.f32 %v1077_v20, %v386_v21  ;;  %v509_v25 = vmul.f32 %v1077_v20, %v442_v23 }
  0xd9   : > { %v895_v26 = vpop.f32.mrf.mxu0  ;;  %v923_v27 = vpop.f32.mrf.mxu1 }
  0xda   : > { %v527_v28 = vadd.f32 %v1082_v22, %v495_v24  ;;  %v541_v29 = vadd.f32 %v1082_v22, %v509_v25 }
  0xdb   : > { %v389_v30 = vpop.f32.mrf.mxu0  ;;  %v445_v31 = vpop.f32.mrf.mxu1 }
  0xdc   : > { %v552_v32 = vmax.f32 %v527_v28, 0.0  ;;  %v496_v33 = vmul.f32 %v1077_v20, %v389_v30  ;;  %v566_v34 = vmax.f32 %v541_v29, 0.0  ;;  %v510_v35 = vmul.f32 %v1077_v20, %v445_v31 }
  0xdd   : > { %v896_v36 = vpop.f32.mrf.mxu0  ;;  %v924_v37 = vpop.f32.mrf.mxu1 }
  0xde   : > { %v577_v38 = vmin.f32 %v552_v32, 1.0  ;;  %v528_v39 = vadd.f32 %v1082_v22, %v496_v33  ;;  %v591_v40 = vmin.f32 %v566_v34, 1.0  ;;  %v542_v41 = vadd.f32 %v1082_v22, %v510_v35 }
  0xdf   : > { %v394_v42 = vpop.f32.mrf.mxu0  ;;  %v450_v43 = vpop.f32.mrf.mxu1 }
  0xe0   : > { %v849_v44 = vpack.c.bf16 %v577_v38, %v577_v38  ;;  %v553_v45 = vmax.f32 %v528_v39, 0.0  ;;  %v863_v46 = vpack.c.bf16 %v591_v40, %v591_v40  ;;  %v497_v47 = vmul.f32 %v1077_v20, %v394_v42 }
  0xe1   : > { %v899_v48 = vpop.f32.mrf.mxu0  ;;  %v567_v49 = vmax.f32 %v542_v41, 0.0  ;;  %v511_v50 = vmul.f32 %v1077_v20, %v450_v43  ;;  %v927_v51 = vpop.f32.mrf.mxu1 }
  0xe2   : > { %704 = vst.msk [vmem:[%s1097_s6] sm:$0xf] %vm703_vm4, %v849_v44  ;;  %v578_v52 = vmin.f32 %v553_v45, 1.0  ;;  %718 = vst.msk [vmem:[%s1097_s6 + $0x38] sm:$0xf] %vm703_vm4, %v863_v46  ;;  %v529_v53 = vadd.f32 %v1082_v22, %v497_v47 }
  0xe3   : > { %v592_v54 = vmin.f32 %v567_v49, 1.0  ;;  %v397_v55 = vpop.f32.mrf.mxu0  ;;  %v543_v56 = vadd.f32 %v1082_v22, %v511_v50  ;;  %v453_v57 = vpop.f32.mrf.mxu1 }
  0xe4   : > { %v850_v58 = vpack.c.bf16 %v578_v52, %v578_v52  ;;  %v554_v59 = vmax.f32 %v529_v53, 0.0  ;;  %v498_v60 = vmul.f32 %v1077_v20, %v397_v55  ;;  %v512_v61 = vmul.f32 %v1077_v20, %v453_v57 }
  0xe5   : > { %v864_v62 = vpack.c.bf16 %v592_v54, %v592_v54  ;;  %v900_v63 = vpop.f32.mrf.mxu0  ;;  %v568_v0 = vmax.f32 %v543_v56, 0.0  ;;  %v928_v1 = vpop.f32.mrf.mxu1 }
  0xe6   : > { %705 = vst.msk [vmem:[%s1097_s6 + $0x4] sm:$0xf] %vm703_vm4, %v850_v58  ;;  %v579_v2 = vmin.f32 %v554_v59, 1.0  ;;  %v530_v3 = vadd.f32 %v1082_v22, %v498_v60  ;;  %v544_v4 = vadd.f32 %v1082_v22, %v512_v61 }
  0xe7   : > { %719 = vst.msk [vmem:[%s1097_s6 + $0x3c] sm:$0xf] %vm703_vm4, %v864_v62  ;;  %v593_v5 = vmin.f32 %v568_v0, 1.0  ;;  %v402_v6 = vpop.f32.mrf.mxu0  ;;  %v458_v7 = vpop.f32.mrf.mxu1 }
  0xe8   : > { %v851_v8 = vpack.c.bf16 %v579_v2, %v579_v2  ;;  %v555_v9 = vmax.f32 %v530_v3, 0.0  ;;  %v499_v10 = vmul.f32 %v1077_v20, %v402_v6  ;;  %v569_v11 = vmax.f32 %v544_v4, 0.0 }
  0xe9   : > { %v865_v12 = vpack.c.bf16 %v593_v5, %v593_v5  ;;  %v903_v13 = vpop.f32.mrf.mxu0  ;;  %v513_v14 = vmul.f32 %v1077_v20, %v458_v7  ;;  %v931_v15 = vpop.f32.mrf.mxu1 }
  0xea   : > { %706 = vst.msk [vmem:[%s1097_s6 + $0x8] sm:$0xf] %vm703_vm4, %v851_v8  ;;  %v580_v16 = vmin.f32 %v555_v9, 1.0  ;;  %v531_v17 = vadd.f32 %v1082_v22, %v499_v10  ;;  %v594_v18 = vmin.f32 %v569_v11, 1.0 }
  0xeb   : > { %720 = vst.msk [vmem:[%s1097_s6 + $0x40] sm:$0xf] %vm703_vm4, %v865_v12  ;;  %v405_v19 = vpop.f32.mrf.mxu0  ;;  %v545_v21 = vadd.f32 %v1082_v22, %v513_v14  ;;  %v461_v23 = vpop.f32.mrf.mxu1 }
  0xec   : > { %v852_v24 = vpack.c.bf16 %v580_v16, %v580_v16  ;;  %v556_v25 = vmax.f32 %v531_v17, 0.0  ;;  %v866_v26 = vpack.c.bf16 %v594_v18, %v594_v18  ;;  %v500_v27 = vmul.f32 %v1077_v20, %v405_v19 }
  0xed   : > { %v904_v28 = vpop.f32.mrf.mxu0  ;;  %v570_v29 = vmax.f32 %v545_v21, 0.0  ;;  %v514_v30 = vmul.f32 %v1077_v20, %v461_v23  ;;  %v932_v31 = vpop.f32.mrf.mxu1 }
  0xee   : > { %707 = vst.msk [vmem:[%s1097_s6 + $0xc] sm:$0xf] %vm703_vm4, %v852_v24  ;;  %v581_v32 = vmin.f32 %v556_v25, 1.0  ;;  %721 = vst.msk [vmem:[%s1097_s6 + $0x44] sm:$0xf] %vm703_vm4, %v866_v26  ;;  %v532_v33 = vadd.f32 %v1082_v22, %v500_v27 }
  0xef   : > { %v595_v34 = vmin.f32 %v570_v29, 1.0  ;;  %v410_v35 = vpop.f32.mrf.mxu0  ;;  %v546_v36 = vadd.f32 %v1082_v22, %v514_v30  ;;  %v466_v37 = vpop.f32.mrf.mxu1 }
  0xf0   : > { %v853_v38 = vpack.c.bf16 %v581_v32, %v581_v32  ;;  %v557_v39 = vmax.f32 %v532_v33, 0.0  ;;  %v501_v40 = vmul.f32 %v1077_v20, %v410_v35  ;;  %v515_v41 = vmul.f32 %v1077_v20, %v466_v37 }
  0xf1   : > { %v867_v42 = vpack.c.bf16 %v595_v34, %v595_v34  ;;  %v907_v43 = vpop.f32.mrf.mxu0  ;;  %v571_v44 = vmax.f32 %v546_v36, 0.0  ;;  %v935_v45 = vpop.f32.mrf.mxu1 }
  0xf2   : > { %708 = vst.msk [vmem:[%s1097_s6 + $0x10] sm:$0xf] %vm703_vm4, %v853_v38  ;;  %v582_v46 = vmin.f32 %v557_v39, 1.0  ;;  %v533_v47 = vadd.f32 %v1082_v22, %v501_v40  ;;  %v547_v48 = vadd.f32 %v1082_v22, %v515_v41 }
  0xf3   : > { %722 = vst.msk [vmem:[%s1097_s6 + $0x48] sm:$0xf] %vm703_vm4, %v867_v42  ;;  %v596_v49 = vmin.f32 %v571_v44, 1.0  ;;  %v413_v50 = vpop.f32.mrf.mxu0  ;;  %v469_v51 = vpop.f32.mrf.mxu1 }
  0xf4   : > { %v854_v52 = vpack.c.bf16 %v582_v46, %v582_v46  ;;  %v558_v53 = vmax.f32 %v533_v47, 0.0  ;;  %v502_v54 = vmul.f32 %v1077_v20, %v413_v50  ;;  %v572_v55 = vmax.f32 %v547_v48, 0.0 }
  0xf5   : > { %v868_v56 = vpack.c.bf16 %v596_v49, %v596_v49  ;;  %v908_v57 = vpop.f32.mrf.mxu0  ;;  %v516_v58 = vmul.f32 %v1077_v20, %v469_v51  ;;  %v936_v59 = vpop.f32.mrf.mxu1 }
  0xf6   : > { %709 = vst.msk [vmem:[%s1097_s6 + $0x14] sm:$0xf] %vm703_vm4, %v854_v52  ;;  %v583_v60 = vmin.f32 %v558_v53, 1.0  ;;  %v534_v61 = vadd.f32 %v1082_v22, %v502_v54  ;;  %v597_v62 = vmin.f32 %v572_v55, 1.0 }
  0xf7   : > { %723 = vst.msk [vmem:[%s1097_s6 + $0x4c] sm:$0xf] %vm703_vm4, %v868_v56  ;;  %v418_v63 = vpop.f32.mrf.mxu0  ;;  %v548_v0 = vadd.f32 %v1082_v22, %v516_v58  ;;  %v474_v1 = vpop.f32.mrf.mxu1 }
  0xf8   : > { %v855_v2 = vpack.c.bf16 %v583_v60, %v583_v60  ;;  %v559_v3 = vmax.f32 %v534_v61, 0.0  ;;  %v869_v4 = vpack.c.bf16 %v597_v62, %v597_v62  ;;  %v503_v5 = vmul.f32 %v1077_v20, %v418_v63 }
  0xf9   : > { %v911_v6 = vpop.f32.mrf.mxu0  ;;  %v573_v7 = vmax.f32 %v548_v0, 0.0  ;;  %v517_v8 = vmul.f32 %v1077_v20, %v474_v1  ;;  %v939_v9 = vpop.f32.mrf.mxu1 }
  0xfa   : > { %710 = vst.msk [vmem:[%s1097_s6 + $0x18] sm:$0xf] %vm703_vm4, %v855_v2  ;;  %v584_v10 = vmin.f32 %v559_v3, 1.0  ;;  %724 = vst.msk [vmem:[%s1097_s6 + $0x50] sm:$0xf] %vm703_vm4, %v869_v4  ;;  %v535_v11 = vadd.f32 %v1082_v22, %v503_v5 }
  0xfb   : > { %v598_v12 = vmin.f32 %v573_v7, 1.0  ;;  %v421_v13 = vpop.f32.mrf.mxu0  ;;  %v549_v14 = vadd.f32 %v1082_v22, %v517_v8  ;;  %v477_v15 = vpop.f32.mrf.mxu1 }
  0xfc   : > { %v856_v16 = vpack.c.bf16 %v584_v10, %v584_v10  ;;  %v560_v17 = vmax.f32 %v535_v11, 0.0  ;;  %v504_v18 = vmul.f32 %v1077_v20, %v421_v13  ;;  %v518_v19 = vmul.f32 %v1077_v20, %v477_v15 }
  0xfd   : > { %v870_v21 = vpack.c.bf16 %v598_v12, %v598_v12  ;;  %v912_v23 = vpop.f32.mrf.mxu0  ;;  %v574_v24 = vmax.f32 %v549_v14, 0.0  ;;  %v940_v25 = vpop.f32.mrf.mxu1 }
  0xfe   : > { %711 = vst.msk [vmem:[%s1097_s6 + $0x1c] sm:$0xf] %vm703_vm4, %v856_v16  ;;  %v585_v26 = vmin.f32 %v560_v17, 1.0  ;;  %v536_v27 = vadd.f32 %v1082_v22, %v504_v18  ;;  %v550_v28 = vadd.f32 %v1082_v22, %v518_v19 }
  0xff   : > { %725 = vst.msk [vmem:[%s1097_s6 + $0x54] sm:$0xf] %vm703_vm4, %v870_v21  ;;  %v599_v29 = vmin.f32 %v574_v24, 1.0  ;;  %v426_v30 = vpop.f32.mrf.mxu0  ;;  %v482_v31 = vpop.f32.mrf.mxu1 }
 0x100   : > { %v857_v32 = vpack.c.bf16 %v585_v26, %v585_v26  ;;  %v561_v33 = vmax.f32 %v536_v27, 0.0  ;;  %v505_v34 = vmul.f32 %v1077_v20, %v426_v30  ;;  %v575_v35 = vmax.f32 %v550_v28, 0.0 }
 0x101   : > { %v871_v36 = vpack.c.bf16 %v599_v29, %v599_v29  ;;  %v915_v37 = vpop.f32.mrf.mxu0  ;;  %v519_v38 = vmul.f32 %v1077_v20, %v482_v31  ;;  %v943_v39 = vpop.f32.mrf.mxu1 }
 0x102   : > { %712 = vst.msk [vmem:[%s1097_s6 + $0x20] sm:$0xf] %vm703_vm4, %v857_v32  ;;  %v586_v40 = vmin.f32 %v561_v33, 1.0  ;;  %v537_v41 = vadd.f32 %v1082_v22, %v505_v34  ;;  %v600_v42 = vmin.f32 %v575_v35, 1.0 }
 0x103   : > { %726 = vst.msk [vmem:[%s1097_s6 + $0x58] sm:$0xf] %vm703_vm4, %v871_v36  ;;  %v429_v43 = vpop.f32.mrf.mxu0  ;;  %v551_v44 = vadd.f32 %v1082_v22, %v519_v38  ;;  %v485_v45 = vpop.f32.mrf.mxu1 }
 0x104   : > { %v858_v46 = vpack.c.bf16 %v586_v40, %v586_v40  ;;  %v562_v47 = vmax.f32 %v537_v41, 0.0  ;;  %v872_v48 = vpack.c.bf16 %v600_v42, %v600_v42  ;;  %v506_v49 = vmul.f32 %v1077_v20, %v429_v43 }
 0x105   : > { %v916_v50 = vpop.f32.mrf.mxu0  ;;  %v576_v51 = vmax.f32 %v551_v44, 0.0  ;;  %v944_v52 = vpop.f32.mrf.mxu1 }
 0x106   : > { %713 = vst.msk [vmem:[%s1097_s6 + $0x24] sm:$0xf] %vm703_vm4, %v858_v46  ;;  %v587_v53 = vmin.f32 %v562_v47, 1.0  ;;  %727 = vst.msk [vmem:[%s1097_s6 + $0x5c] sm:$0xf] %vm703_vm4, %v872_v48  ;;  %v538_v54 = vadd.f32 %v1082_v22, %v506_v49 }
 0x107   : > { %v601_v55 = vmin.f32 %v576_v51, 1.0  ;;  %v434_v56 = vpop.f32.mrf.mxu0 }
 0x108   : > { %v859_v57 = vpack.c.bf16 %v587_v53, %v587_v53  ;;  %v563_v58 = vmax.f32 %v538_v54, 0.0  ;;  %v507_v59 = vmul.f32 %v1077_v20, %v434_v56 }
 0x109   : > { %v873_v60 = vpack.c.bf16 %v601_v55, %v601_v55  ;;  %v919_v61 = vpop.f32.mrf.mxu0 }
 0x10a   : > { %714 = vst.msk [vmem:[%s1097_s6 + $0x28] sm:$0xf] %vm703_vm4, %v859_v57  ;;  %v588_v62 = vmin.f32 %v563_v58, 1.0  ;;  %v539_v63 = vadd.f32 %v1082_v22, %v507_v59 }
 0x10b   : > { %728 = vst.msk [vmem:[%s1097_s6 + $0x60] sm:$0xf] %vm703_vm4, %v873_v60  ;;  %v437_v0 = vpop.f32.mrf.mxu0 }
 0x10c   : > { %v860_v1 = vpack.c.bf16 %v588_v62, %v588_v62  ;;  %v564_v2 = vmax.f32 %v539_v63, 0.0  ;;  %v508_v3 = vmul.f32 %v1077_v20, %v437_v0 }
 0x10d   : > { %v920_v4 = vpop.f32.mrf.mxu0 }
 0x10e   : > { %715 = vst.msk [vmem:[%s1097_s6 + $0x2c] sm:$0xf] %vm703_vm4, %v860_v1  ;;  %v589_v5 = vmin.f32 %v564_v2, 1.0  ;;  %v540_v6 = vadd.f32 %v1082_v22, %v508_v3 }
 0x110   : > { %v861_v7 = vpack.c.bf16 %v589_v5, %v589_v5  ;;  %v565_v8 = vmax.f32 %v540_v6, 0.0 }
 0x112   : > { %716 = vst.msk [vmem:[%s1097_s6 + $0x30] sm:$0xf] %vm703_vm4, %v861_v7  ;;  %v590_v9 = vmin.f32 %v565_v8, 1.0 }
 0x114   : > { %v862_v10 = vpack.c.bf16 %v590_v9, %v590_v9 }
 0x116   : > { %717 = vst.msk [vmem:[%s1097_s6 + $0x34] sm:$0xf] %vm703_vm4, %v862_v10 }
 0x117 PF: > { %s14_s15 = sadd.s32 1, %s981_s15  }
 0x118   : > { %p11_p4 = scmp.ge.s32.totalorder %s14_s15, 4  }
 0x11a   :  { %13 = sbr.rel (!%p11_p4) target bundleno = 1 (0x1), region = 66 }

// kernel: forward.4
= control target key start
LH: loop header
LB: loop body
LE: loop exit
PB: predicated region body
PF: predicated region fallthrough
CT: control target
= control target key end

     0   :  { %s588_s15 = smov 0   ;;  %s651_s0 = inlined_call_operand.vmem [shape: bf16[64,150], index: 0, kind: input, shape index: {}]   ;;  %s652_s1 = inlined_call_operand.vmem [shape: bf16[150,16], index: 1, kind: input, shape index: {}]   ;;  %s653_s2 = inlined_call_operand.vmem [shape: f32[1,16], index: 2, kind: input, shape index: {}]   ;;  %s654_s3 = inlined_call_operand.vmem [shape: f32[1,16], index: 3, kind: input, shape index: {}]   ;;  %s655_s4 = inlined_call_operand.vmem [shape: bf16[64,16], index: 4, kind: output, shape index: {}]  }
   0x1 LB: > { %s470_s16 = sadd.s32 4294967295, %s560_s15   ;;  %p474_p0 = scmp.ge.s32.totalorder %s560_s15, 1  ;;  %s560_s15 = sphi %s588_s15, %s14_s15  }
   0x2   : > { %p164_p1 = scmp.lt.s32.totalorder %s560_s15, 3 }
   0x4   : > { %p165_p2 = pnand %p474_p0, %p164_p1 }
   0x5   : > { %s475_s21 = sshll.u32 (!%p165_p2), %s470_s16, 2 }
   0x6   : > { %168 = sbr.rel (%p165_p2) target bundleno = 260 (0x104), region = 36  ;;  %p192_p3 = scmp.lt.s32.totalorder (!%p165_p2), %s475_s21, 7 }
   0xb   : > { %v538_v0 = vld [vmem:[%s652_s1 + $0x38] sm:$0xff]   ;;  %v562_v1 = vmov 0   ;;  %v539_v2 = vld [vmem:[%s652_s1 + $0x30] sm:$0xff]   ;;  %s657_s21 = smov (!%p192_p3, %s475_s21), 7  ;;  %v540_v3 = vld [vmem:[%s652_s1 + $0x28] sm:$0xff]   ;;  %vm303_vm0 = vcmask 179200  }
   0xc   : > { %314 = vmatprep.subr.bf16.mxu0 %v562_v1  ;;  %509 = vmatprep.subr.bf16.mxu1 %v562_v1  ;;  %s504_s24 = sshll.u32 %s657_s21, 3  ;;  %v541_v4 = vld [vmem:[%s652_s1 + $0x20] sm:$0xff]   ;;  %v542_v7 = vld [vmem:[%s652_s1 + $0x18] sm:$0xff]   ;;  %v543_v8 = vld [vmem:[%s652_s1 + $0x10] sm:$0xff]   ;;  %vm310_vm1 = vcmask 1042432   ;;  %s479_s22 = sshll.u32 %s657_s21, 2 }
   0xd   : > { %315 = vmatpush1.bf16.msra.mxu0 %v538_v0  ;;  %519 = vmatpush1.bf16.msra.mxu1 %v538_v0  ;;  %s611_s27 = scalar_lea.vmem %s651_s0, %s504_s24  ;;  %v544_v9 = vld [vmem:[%s652_s1 + $0x8] sm:$0xff]   ;;  %v545_v10 = vld [vmem:[%s652_s1] sm:$0xff]   ;;  %s202_s25 = scalar_lea.vmem %s655_s4, %s479_s22  ;;  %vm409_vm2 = vcmask 125952  }
   0xe   : > { %316 = vmatprep.subr.bf16.mxu0 %v562_v1  ;;  %510 = vmatprep.subr.bf16.mxu1 %v562_v1  ;;  %v550_v5 = vld [vmem:[%s611_s27 + $0x4] ss:$8 sps:$4 sm:$0xff]   ;;  %v553_v6 = vld [vmem:[%s611_s27 + $0x14] ss:$8 sps:$4 sm:$0xff]   ;;  %v548_v14 = vld [vmem:[%s611_s27] ss:$8 sps:$4 sm:$0xff]  }
   0xf   : > { %494 = vmatprep.mubr.msk.bf16.mxu0 %vm303_vm0, %v550_v5  ;;  %495 = vmatprep.mubr.msk.bf16.mxu1 %vm303_vm0, %v553_v6  ;;  %v546_v11 = vld [vmem:[%s652_s1 + $0x48] ss:$0 sps:$4 sm:$0x77]   ;;  %v547_v13 = vld [vmem:[%s652_s1 + $0x40] sm:$0xff]   ;;  %v551_v15 = vld [vmem:[%s611_s27 + $0x10] ss:$8 sps:$4 sm:$0xff]  }
  0x10   : > { %v312_v12 = vsel %vm310_vm1, %v546_v11, 0  ;;  %v496_v16 = vld [vmem:[%s653_s2] ss:$0 sm:$0xff] }
  0x11   : > { %317 = vmatpush1.bf16.msra.mxu0 %v539_v2  ;;  %520 = vmatpush1.bf16.msra.mxu1 %v539_v2  ;;  %v497_v18 = vld [vmem:[%s654_s3] ss:$0 sm:$0xff] }
  0x12   : > { %318 = vmatprep.subr.bf16.mxu0 %v562_v1  ;;  %511 = vmatprep.subr.bf16.mxu1 %v562_v1 }
  0x15   : > { %319 = vmatpush1.bf16.msra.mxu0 %v540_v3  ;;  %521 = vmatpush1.bf16.msra.mxu1 %v540_v3 }
  0x16   : > { %320 = vmatprep.subr.bf16.mxu0 %v562_v1  ;;  %512 = vmatprep.subr.bf16.mxu1 %v562_v1 }
  0x19   : > { %321 = vmatpush1.bf16.msra.mxu0 %v541_v4  ;;  %522 = vmatpush1.bf16.msra.mxu1 %v541_v4 }
  0x1a   : > { %322 = vmatprep.subr.bf16.mxu0 %v562_v1  ;;  %513 = vmatprep.subr.bf16.mxu1 %v562_v1 }
  0x1d   : > { %323 = vmatpush1.bf16.msra.mxu0 %v542_v7  ;;  %523 = vmatpush1.bf16.msra.mxu1 %v542_v7 }
  0x1e   : > { %324 = vmatprep.subr.bf16.mxu0 %v562_v1  ;;  %514 = vmatprep.subr.bf16.mxu1 %v562_v1 }
  0x21   : > { %325 = vmatpush1.bf16.msra.mxu0 %v543_v8  ;;  %524 = vmatpush1.bf16.msra.mxu1 %v543_v8 }
  0x22   : > { %326 = vmatprep.subr.bf16.mxu0 %v562_v1  ;;  %515 = vmatprep.subr.bf16.mxu1 %v562_v1 }
  0x25   : > { %327 = vmatpush1.bf16.msra.mxu0 %v544_v9  ;;  %525 = vmatpush1.bf16.msra.mxu1 %v544_v9 }
  0x26   : > { %328 = vmatprep.subr.bf16.mxu0 %v562_v1  ;;  %516 = vmatprep.subr.bf16.mxu1 %v562_v1 }
  0x29   : > { %329 = vmatpush1.bf16.msra.mxu0 %v545_v10  ;;  %526 = vmatpush1.bf16.msra.mxu1 %v545_v10 }
  0x2a   : > { %342 = vmatprep.subr.bf16.mxu0 %v562_v1  ;;  %517 = vmatprep.subr.bf16.mxu1 %v562_v1 }
  0x2d   : > { %343 = vmatpush2.bf16.msra.mxu0 %v312_v12  ;;  %527 = vmatpush2.bf16.msra.mxu1 %v312_v12 }
  0x2e   : > { %344 = vmatprep.subr.bf16.mxu0 %v562_v1  ;;  %518 = vmatprep.subr.bf16.mxu1 %v562_v1 }
  0x31   : > { %345 = vmatpush2.bf16.msra.mxu0 %v547_v13  ;;  %528 = vmatpush2.bf16.msra.mxu1 %v547_v13 }
  0x34   : > { %347 = vmatmul.mubr.bf16.vlgmr.msra.gmra.mxu0 %v548_v14  ;;  %355 = vmatmul.mubr.bf16.vlgmr.msra.gmra.mxu1 %v551_v15 }
  0xf4   : > { %v348_v17 = vpop.f32.mrf.mxu0  ;;  %v356_v19 = vpop.f32.mrf.mxu1 }
  0xf5   : > { %v370_v20 = vmul.f32 %v496_v16, %v348_v17  ;;  %v372_v21 = vmul.f32 %v496_v16, %v356_v19 }
  0xf6   : > { %v350_v22 = vpop.f32.mrf.mxu0  ;;  %v358_v23 = vpop.f32.mrf.mxu1 }
  0xf7   : > { %v381_v24 = vadd.f32 %v497_v18, %v370_v20  ;;  %v383_v25 = vadd.f32 %v497_v18, %v372_v21 }
  0xf8   : > { %v351_v26 = vpop.f32.mrf.mxu0  ;;  %v359_v27 = vpop.f32.mrf.mxu1 }
  0xf9   : > { %v385_v28 = vmax.f32 %v381_v24, 0.0  ;;  %v371_v29 = vmul.f32 %v496_v16, %v351_v26  ;;  %v373_v30 = vmul.f32 %v496_v16, %v359_v27  ;;  %v387_v31 = vmax.f32 %v383_v25, 0.0 }
  0xfa   : > { %v353_v32 = vpop.f32.mrf.mxu0  ;;  %v361_v33 = vpop.f32.mrf.mxu1 }
  0xfb   : > { %v389_v34 = vmin.f32 %v385_v28, 1.0  ;;  %v382_v35 = vadd.f32 %v497_v18, %v371_v29  ;;  %v384_v36 = vadd.f32 %v497_v18, %v373_v30  ;;  %v391_v40 = vmin.f32 %v387_v31, 1.0 }
  0xfd   : > { %v505_v37 = vpack.c.bf16 %v389_v34, %v389_v34  ;;  %v386_v38 = vmax.f32 %v382_v35, 0.0  ;;  %v388_v39 = vmax.f32 %v384_v36, 0.0  ;;  %v507_v44 = vpack.c.bf16 %v391_v40, %v391_v40 }
  0xff   : > { %410 = vst.msk [vmem:[%s202_s25] sm:$0xf] %vm409_vm2, %v505_v37  ;;  %v390_v41 = vmin.f32 %v386_v38, 1.0  ;;  %v392_v42 = vmin.f32 %v388_v39, 1.0  ;;  %412 = vst.msk [vmem:[%s202_s25 + $0x8] sm:$0xf] %vm409_vm2, %v507_v44 }
 0x101   : > { %v506_v43 = vpack.c.bf16 %v390_v41, %v390_v41  ;;  %v508_v45 = vpack.c.bf16 %v392_v42, %v392_v42 }
 0x103   : > { %411 = vst.msk [vmem:[%s202_s25 + $0x4] sm:$0xf] %vm409_vm2, %v506_v43  ;;  %413 = vst.msk [vmem:[%s202_s25 + $0xc] sm:$0xf] %vm409_vm2, %v508_v45 }
 0x104 PF: > { %s14_s15 = sadd.s32 1, %s560_s15  }
 0x105   : > { %p11_p4 = scmp.ge.s32.totalorder %s14_s15, 4  }
 0x107   :  { %13 = sbr.rel (!%p11_p4) target bundleno = 1 (0x1), region = 66 }

// kernel: forward.5
= control target key start
LH: loop header
LB: loop body
LE: loop exit
PB: predicated region body
PF: predicated region fallthrough
CT: control target
= control target key end

     0   :  { %v828_v1 = vmov 0   ;;  %v88_v20 = vlaneseq  ;;  %v829_v25 = vmov 1966171168   ;;  %s1034_s0 = inlined_call_operand.vmem [shape: bf16[2,400], index: 0, kind: input, shape index: {}]   ;;  %s1035_s1 = inlined_call_operand.vmem [shape: bf16[400,120], index: 1, kind: input, shape index: {}]   ;;  %s1036_s2 = inlined_call_operand.vmem [shape: bf16[120,84], index: 2, kind: input, shape index: {}]   ;;  %s1037_s3 = inlined_call_operand.vmem [shape: bf16[84,10], index: 3, kind: input, shape index: {}]   ;;  %s1038_s4 = inlined_call_operand.vmem [shape: f32[1,10], index: 4, kind: input, shape index: {}]   ;;  %s1039_s5 = inlined_call_operand.vmem [shape: f32[1,10], index: 5, kind: input, shape index: {}]   ;;  %s1040_s6 = inlined_call_operand.hbm [shape: f32[2,10], index: 6, kind: output, shape index: {}]  }
   0x1   :  { %v781_v0 = vld [vmem:[%s1035_s1 + $0x78] sm:$0xff]   ;;  %298 = vmatprep.subr.bf16.mxu1 %v828_v1  ;;  %v784_v4 = vld [vmem:[%s1035_s1 + $0x70] sm:$0xff]   ;;  %v787_v7 = vld [vmem:[%s1035_s1 + $0x68] sm:$0xff]   ;;  %v86_v26 = vunpack.c.l.s4 %v829_v25 }
   0x2   :  { %v782_v2 = vld [vmem:[%s1035_s1 + $0xb8] sm:$0xff]   ;;  %668 = vmatprep.subr.bf16.mxu0 %v781_v0  ;;  %v785_v5 = vld [vmem:[%s1035_s1 + $0xb0] sm:$0xff]   ;;  %v788_v8 = vld [vmem:[%s1035_s1 + $0xa8] sm:$0xff]   ;;  %v89_v27 = vshrl.u32 %v88_v20, 7 }
   0x3   :  { %v783_v3 = vld [vmem:[%s1035_s1 + $0x38] sm:$0xff]   ;;  %299 = vmatpush1.bf16.msra.mxu1 %v782_v2  ;;  %v786_v6 = vld [vmem:[%s1035_s1 + $0x30] sm:$0xff]   ;;  %v789_v9 = vld [vmem:[%s1035_s1 + $0x28] sm:$0xff]   ;;  %v87_v30 = vunpack.c.0.s8 %v86_v26 }
   0x4   :  { %669 = vmatpush3.bf16.msra.mxu0 %v783_v3  ;;  %300 = vmatprep.subr.bf16.mxu1 %v828_v1  ;;  %v790_v10 = vld [vmem:[%s1035_s1 + $0x60] sm:$0xff]   ;;  %v793_v13 = vld [vmem:[%s1035_s1 + $0x58] sm:$0xff]   ;;  %v796_v16 = vld [vmem:[%s1035_s1 + $0x50] sm:$0xff]  }
   0x5   :  { %670 = vmatprep.subr.bf16.mxu0 %v784_v4  ;;  %v791_v11 = vld [vmem:[%s1035_s1 + $0xa0] sm:$0xff]   ;;  %v794_v14 = vld [vmem:[%s1035_s1 + $0x98] sm:$0xff]   ;;  %v797_v17 = vld [vmem:[%s1035_s1 + $0x90] sm:$0xff]  }
   0x6   :  { %v792_v12 = vld [vmem:[%s1035_s1 + $0x20] sm:$0xff]   ;;  %v795_v15 = vld [vmem:[%s1035_s1 + $0x18] sm:$0xff]   ;;  %v798_v18 = vld [vmem:[%s1035_s1 + $0x10] sm:$0xff]  }
   0x7   :  { %301 = vmatpush1.bf16.msra.mxu1 %v785_v5  ;;  %v799_v19 = vld [vmem:[%s1035_s1 + $0x48] sm:$0xff]   ;;  %v578_v23 = vld.sshfl [vmem:[%s1034_s0] sm:$0x33 pattern:$0x75316420] }
   0x8   :  { %671 = vmatpush3.bf16.msra.mxu0 %v786_v6  ;;  %302 = vmatprep.subr.bf16.mxu1 %v828_v1  ;;  %v800_v21 = vld [vmem:[%s1035_s1 + $0x88] sm:$0xff]   ;;  %v802_v24 = vld [vmem:[%s1035_s1 + $0x40] sm:$0xff]   ;;  %v84_v29 = vcombine.high %v578_v23, %v578_v23 }
   0x9   :  { %672 = vmatprep.subr.bf16.mxu0 %v787_v7  ;;  %v801_v22 = vld [vmem:[%s1035_s1 + $0x8] sm:$0xff]   ;;  %v803_v28 = vld [vmem:[%s1035_s1 + $0x80] sm:$0xff]  }
   0xb   :  { %303 = vmatpush1.bf16.msra.mxu1 %v788_v8 }
   0xc   :  { %673 = vmatpush3.bf16.msra.mxu0 %v789_v9  ;;  %304 = vmatprep.subr.bf16.mxu1 %v828_v1 }
   0xd   :  { %674 = vmatprep.subr.bf16.mxu0 %v790_v10 }
   0xf   :  { %305 = vmatpush1.bf16.msra.mxu1 %v791_v11 }
  0x10   :  { %675 = vmatpush3.bf16.msra.mxu0 %v792_v12  ;;  %306 = vmatprep.subr.bf16.mxu1 %v828_v1 }
  0x11   :  { %676 = vmatprep.subr.bf16.mxu0 %v793_v13 }
  0x13   :  { %307 = vmatpush1.bf16.msra.mxu1 %v794_v14 }
  0x14   :  { %677 = vmatpush3.bf16.msra.mxu0 %v795_v15  ;;  %308 = vmatprep.subr.bf16.mxu1 %v828_v1 }
  0x15   :  { %678 = vmatprep.subr.bf16.mxu0 %v796_v16 }
  0x17   :  { %309 = vmatpush1.bf16.msra.mxu1 %v797_v17 }
  0x18   :  { %679 = vmatpush3.bf16.msra.mxu0 %v798_v18  ;;  %310 = vmatprep.subr.bf16.mxu1 %v828_v1 }
  0x19   :  { %680 = vmatprep.subr.bf16.mxu0 %v799_v19 }
  0x1b   :  { %311 = vmatpush1.bf16.msra.mxu1 %v800_v21 }
  0x1c   :  { %11 = vsyncpa [#allocation3], 0  ;;  %681 = vmatpush3.bf16.msra.mxu0 %v801_v22  ;;  %312 = vmatprep.subr.bf16.mxu1 %v828_v1  ;;  %v804_v31 = vld [vmem:[%s1035_s1] sm:$0xff]   ;;  %v90_v32 = vsub.s32 %v87_v30, %v89_v27  ;;  %v354_v33 = vld [vmem:[%s1036_s2 + $0x38] sm:$0xf]  ;;  %vm254_vm0 = vcmask 130048  }
  0x1d   :  { %682 = vmatprep.subr.bf16.mxu0 %v802_v24  ;;  %v805_v36 = vld [vmem:[%s1035_s1 + $0xc0] sm:$0xff]   ;;  %v663_v37 = vld [vmem:[%s1036_s2 + $0x30] sm:$0xff]   ;;  %v369_v38 = vunpack.c.l.bf16 %v354_v33  ;;  %v830_v40 = vmov 0.0   ;;  %v662_v43 = vld [vmem:[%s1036_s2 + $0x28] sm:$0xff]   ;;  %vm831_vm1 = vmmov 0   ;;  %vm472_vm2 = vcmask 1043456  }
  0x1e   :  { %v98_v34 = vrot.slane %v84_v29, %v90_v32  ;;  %v91_v35 = vrot.slane %v578_v23, %v90_v32  ;;  %v637_v42 = vunpack.c.h.bf16 %v663_v37  ;;  %v636_v44 = vunpack.c.l.bf16 %v663_v37  ;;  %v661_v46 = vld [vmem:[%s1036_s2 + $0x20] sm:$0xff]   ;;  %v660_v49 = vld [vmem:[%s1036_s2 + $0x18] sm:$0xff]   ;;  %v659_v53 = vld [vmem:[%s1036_s2 + $0x10] sm:$0xff]   ;;  %s832_s28 = smov [#allocation2]  }
  0x1f   :  { %313 = vmatpush1.bf16.msra.mxu1 %v803_v28  ;;  %v633_v45 = vunpack.c.h.bf16 %v662_v43  ;;  %v632_v47 = vunpack.c.l.bf16 %v662_v43  ;;  %v629_v48 = vunpack.c.h.bf16 %v661_v46  ;;  %v628_v50 = vunpack.c.l.bf16 %v661_v46  ;;  %v658_v56 = vld [vmem:[%s1036_s2 + $0x8] sm:$0xff]   ;;  %v611_v59 = vld [vmem:[%s1036_s2] sm:$0xff]   ;;  %v666_v2 = vld [vmem:[%s1037_s3 + $0x18] sm:$0xff]   ;;  %s570_s1 = sshll.u32 %s832_s28, 4  ;;  %s571_s1 = int_to_ptr.vmem [resolvable:$true] %s570_s1 }
  0x20   :  { %683 = vmatpush3.bf16.msra.mxu0 %v804_v31  ;;  %328 = vmatprep.subr.bf16.mxu1 %v828_v1  ;;  %v100_v39 = vcombine.high %v98_v34, %v98_v34  ;;  %v99_v41 = vcombine.high %v91_v35, %v91_v35  ;;  %v625_v51 = vunpack.c.h.bf16 %v660_v49  ;;  %v624_v52 = vunpack.c.l.bf16 %v660_v49  ;;  %v456_v62 = vld [vmem:[%s1037_s3 + $0x28] sm:$0x3]  ;;  %v667_v63 = vld [vmem:[%s1037_s3 + $0x20] sm:$0xff]   ;;  %v665_v5 = vld [vmem:[%s1037_s3 + $0x10] sm:$0xff]   ;;  %s806_s29 = scalar_lea.vmem %s571_s1, 32  ;;  %p811_p1 = scmp.lt.s32.totalorder %s571_s1, %s571_s1 }
  0x21   :  { %290 = vmatprep.mubr.bf16.mxu0 %v98_v34  ;;  %718 = vmatprep.subr.mxu0 %v830_v40  ;;  %v621_v54 = vunpack.c.h.bf16 %v659_v53  ;;  %v620_v55 = vunpack.c.l.bf16 %v659_v53  ;;  %v617_v57 = vunpack.c.h.bf16 %v658_v56  ;;  %v616_v58 = vunpack.c.l.bf16 %v658_v56  ;;  %v664_v8 = vld [vmem:[%s1037_s3 + $0x8] sm:$0xff]   ;;  %v639_v24 = vld [vmem:[%s1037_s3] sm:$0xff]   ;;  %p807_p0 = scmp.ne.s32.totalorder %s571_s1, %s806_s29  ;;  %p812_p2 = scmp.lt.s32.totalorder %s806_s29, %s806_s29 }
  0x22   :  { %604 = vmatprep.mubr.msk.bf16.mxu1 %vm254_vm0, %v100_v39  ;;  %v613_v60 = vunpack.c.h.bf16 %v611_v59  ;;  %v612_v61 = vunpack.c.l.bf16 %v611_v59  ;;  %v467_v0 = vunpack.c.l.bf16 %v456_v62  ;;  %v657_v1 = vunpack.c.h.bf16 %v667_v63  ;;  %v608_v31 = vld [vmem:[%s1038_s4] ss:$0 sm:$0xff] }
  0x23   :  { %291 = vmatmul.mubr.bf16.vlgmr.msra.gmra.mxu0 %v91_v35  ;;  %329 = vmatpush2.bf16.msra.mxu1 %v805_v36  ;;  %v656_v3 = vunpack.c.l.bf16 %v667_v63  ;;  %v653_v4 = vunpack.c.h.bf16 %v666_v2  ;;  %v652_v6 = vunpack.c.l.bf16 %v666_v2  ;;  %v649_v7 = vunpack.c.h.bf16 %v665_v5  ;;  %v609_v33 = vld [vmem:[%s1039_s5] ss:$0 sm:$0xff]  ;;  %p813_p3 = por %p812_p2, %p811_p1 }
  0x24   :  { %719 = vmatpush3.msra.mxu0 %v369_v38  ;;  %751 = vmatprep.subr.mxu1 %v830_v40  ;;  %v648_v9 = vunpack.c.l.bf16 %v665_v5  ;;  %v645_v10 = vunpack.c.h.bf16 %v664_v8  ;;  %vm370_vm3 = vcmask 982016   ;;  %v644_v23 = vunpack.c.l.bf16 %v664_v8 }
  0x25   :  { %720 = vmatprep.subr.mxu0 %v830_v40  ;;  %748 = vmatprep.mubr.msk.f32.mxu0 %vm831_vm1, %v830_v40  ;;  %v641_v25 = vunpack.c.h.bf16 %v639_v24  ;;  %v640_v26 = vunpack.c.l.bf16 %v639_v24  ;;  %vm468_vm4 = vcmask 687104   ;;  %vm562_vm5 = vcmask 74752   ;;  %p814_p4 = pnand %p813_p3, %p807_p0 }
  0x26   :  { %331 = vmatmul.mubr.bf16.vlgmr.msra.gmra.mxu1 %v99_v41  ;;  %721 = vmatpush3.msra.mxu0 %v637_v42 }
  0x27   :  { %722 = vmatprep.subr.mxu0 %v830_v40  ;;  %773 = vmatprep.mubr.msk.f32.mxu1 %vm831_vm1, %v830_v40 }
  0x28   :  { %723 = vmatpush3.msra.mxu0 %v636_v44  ;;  %752 = vmatpush3.msk.msra.mxu1 %vm472_vm2, %v467_v0 }
  0x29   :  { %724 = vmatprep.subr.mxu0 %v830_v40  ;;  %753 = vmatprep.subr.mxu1 %v830_v40 }
  0x2a   :  { %725 = vmatpush3.msra.mxu0 %v633_v45  ;;  %754 = vmatpush3.msra.mxu1 %v657_v1 }
  0x2b   :  { %726 = vmatprep.subr.mxu0 %v830_v40  ;;  %755 = vmatprep.subr.mxu1 %v830_v40 }
  0x2c   :  { %727 = vmatpush3.msra.mxu0 %v632_v47  ;;  %756 = vmatpush3.msra.mxu1 %v656_v3 }
  0x2d   :  { %728 = vmatprep.subr.mxu0 %v830_v40  ;;  %757 = vmatprep.subr.mxu1 %v830_v40 }
  0x2e   :  { %729 = vmatpush3.msra.mxu0 %v629_v48  ;;  %758 = vmatpush3.msra.mxu1 %v653_v4 }
  0x2f   :  { %730 = vmatprep.subr.mxu0 %v830_v40  ;;  %759 = vmatprep.subr.mxu1 %v830_v40 }
  0x30   :  { %731 = vmatpush3.msra.mxu0 %v628_v50  ;;  %760 = vmatpush3.msra.mxu1 %v652_v6 }
  0x31   :  { %732 = vmatprep.subr.mxu0 %v830_v40  ;;  %761 = vmatprep.subr.mxu1 %v830_v40 }
  0x32   :  { %733 = vmatpush3.msra.mxu0 %v625_v51  ;;  %762 = vmatpush3.msra.mxu1 %v649_v7 }
  0x33   :  { %734 = vmatprep.subr.mxu0 %v830_v40  ;;  %763 = vmatprep.subr.mxu1 %v830_v40 }
  0x34   :  { %735 = vmatpush3.msra.mxu0 %v624_v52  ;;  %764 = vmatpush3.msra.mxu1 %v648_v9 }
  0x35   :  { %736 = vmatprep.subr.mxu0 %v830_v40  ;;  %765 = vmatprep.subr.mxu1 %v830_v40 }
  0x36   :  { %737 = vmatpush3.msra.mxu0 %v621_v54  ;;  %766 = vmatpush3.msra.mxu1 %v645_v10 }
  0x37   :  { %738 = vmatprep.subr.mxu0 %v830_v40  ;;  %767 = vmatprep.subr.mxu1 %v830_v40 }
  0x38   :  { %739 = vmatpush3.msra.mxu0 %v620_v55  ;;  %768 = vmatpush3.msra.mxu1 %v644_v23 }
  0x39   :  { %740 = vmatprep.subr.mxu0 %v830_v40  ;;  %769 = vmatprep.subr.mxu1 %v830_v40 }
  0x3a   :  { %741 = vmatpush3.msra.mxu0 %v617_v57  ;;  %770 = vmatpush3.msra.mxu1 %v641_v25 }
  0x3b   :  { %742 = vmatprep.subr.mxu0 %v830_v40  ;;  %771 = vmatprep.subr.mxu1 %v830_v40 }
  0x3c   :  { %743 = vmatpush3.msra.mxu0 %v616_v58  ;;  %772 = vmatpush3.msra.mxu1 %v640_v26 }
  0x3d   :  { %744 = vmatprep.subr.mxu0 %v830_v40 }
  0x3e   :  { %745 = vmatpush3.msra.mxu0 %v613_v60 }
  0x3f   :  { %746 = vmatprep.subr.mxu0 %v830_v40 }
  0x40   :  { %747 = vmatpush3.msra.mxu0 %v612_v61 }
  0xe3   :  { %v684_v11 = vpop.f32.mrf.mxu0 }
  0xe5   :  { %v685_v12 = vpop.f32.mrf.mxu0 }
  0xe6   :  { %v686_v13 = vadd.f32 %v685_v12, %v684_v11  ;;  %v332_v14 = vpop.f32.mrf.mxu1 }
  0xe7   :  { %v687_v15 = vpop.f32.mrf.mxu0 }
  0xe8   :  { %v333_v16 = vadd.f32 %v686_v13, %v332_v14  ;;  %v334_v17 = vpop.f32.mrf.mxu1 }
  0xe9   :  { %v688_v18 = vpop.f32.mrf.mxu0 }
  0xea   :  { %v338_v19 = vmax.f32 %v333_v16, 0.0  ;;  %v335_v20 = vpop.f32.mrf.mxu1 }
  0xec   :  { %v339_v21 = vmin.f32 %v338_v19, 1.0  ;;  %v336_v22 = vpop.f32.mrf.mxu1 }
  0xee   :  { %749 = vmatmul.mubr.msk.f32.vlgmr.msra.gmra.mxu0 %vm370_vm3, %v339_v21 }
 0x1ae   :  { %v440_v27 = vpop.f32.mrf.mxu0 }
 0x1af   :  { %v444_v28 = vmax.f32 %v440_v27, 0.0 }
 0x1b0   :  { %v750_v29 = vpop.f32.mrf.mxu0 }
 0x1b1   :  { %v445_v30 = vmin.f32 %v444_v28, 1.0 }
 0x1b3   :  { %774 = vmatmul.mubr.msk.f32.vlgmr.msra.gmra.mxu1 %vm468_vm4, %v445_v30 }
 0x273   :  { %v542_v32 = vpop.f32.mrf.mxu1 }
 0x274   :  { %v553_v34 = vmul.f32 %v608_v31, %v542_v32 }
 0x275   :  { %v775_v35 = vpop.f32.mrf.mxu1 }
 0x276   :  { %v561_v36 = vadd.f32 %v609_v33, %v553_v34 }
 0x278   :  { %563 = vst.msk [vmem:[#allocation2] sm:$0x3] %vm562_vm5, %v561_v36 }
 0x279   :  { %817 = shalt.err (!%p814_p4)
}
 0x27a   :  { %573 = dma.vmem_to_hbm [thread:$0]  %s571_s1, 32, %s1040_s6, [#allocation3]  }
 0x27b   :  { %826 = dma.done.wait [#allocation3], 32  }
 0x27c   :  { %827 = vsyncadd [#allocation3], 4294967264 }
 0x27d   :  { %577 = vsyncpa [#allocation3], 1 }

</bundles_post_ra>
